<compile_context>
chip_gen: v5e
topology: v5e:2x2
jax: 0.10.0
libtpu: 0.0.40
codegen_flags: <defaults>
</compile_context>

<pallas_src>
import math

import jax
import jax.numpy as jnp
from jax import lax
from jax.experimental import pallas as pl
from jax.experimental.pallas import tpu as pltpu


def _patch_embed_kernel(x_ref, w_ref, b_ref, o_ref):
    # x_ref: (TM, Kp) compute dtype; w_ref: (Kp, D) compute dtype;
    # b_ref: (1, D) f32; o_ref: (TM, D) out dtype.
    acc = jnp.dot(x_ref[...], w_ref[...], preferred_element_type=jnp.float32)
    o_ref[...] = (acc + b_ref[...]).astype(o_ref.dtype)


def _choose_row_tile(M, cap=1024):
    """Pick (tm, Mp): a row tile and the (possibly padded) row count.

    Prefer the largest multiple-of-8 divisor of M not exceeding `cap`
    (no padding, no out[:M] copy), and prefer tiles that leave the grid
    length >= 2 so "parallel" dimension_semantics can split work across
    the two TensorCores on v7x.
    """
    divisors = [d for d in range(8, min(M, cap) + 1, 8) if M % d == 0]
    if divisors:
        multi_step = [d for d in divisors if M // d >= 2]
        tm = max(multi_step) if multi_step else max(divisors)
        return tm, M
    if M <= cap:
        # Tiny problem: single full-extent block ((8,128) rule waived).
        return M, M
    # Fallback for awkward M: pad up to a multiple of an 8-aligned tile.
    tm = cap
    Mp = pl.cdiv(M, tm) * tm
    return tm, Mp


def patch_embeddings(x, weight, bias, *, patch_size,
                     compute_dtype=jnp.bfloat16, out_dtype=None,
                     row_tile_cap=1024):
    """
    x:      (B, C, H, W)
    weight: (hidden, C, P, P)   (PyTorch nn.Conv2d weight layout)
    bias:   (hidden,)
    returns (B, num_patches, hidden) -- matches Conv2d + flatten(2).transpose(1,2)
    """
    B, C, H, W = x.shape
    P = patch_size
    hidden = weight.shape[0]
    nh, nw = H // P, W // P
    N = nh * nw                       # patches per image
    K = C * P * P                     # flattened patch length
    out_dtype = x.dtype if out_dtype is None else out_dtype

    # --- wrapper-side layout plumbing (no compute) -------------------------
    # Cast first so the patchify materialization moves compute-dtype bytes and
    # XLA fuses cast + transpose (+ K pad) into a single pass.
    # (B, C, H, W) -> (B, nh, nw, C, P, P) -> (B*N, K); flatten order (c,kh,kw)
    # matches the OIHW conv-weight flattening below.
    xc = x.astype(compute_dtype)
    patches = xc.reshape(B, C, nh, P, nw, P).transpose(0, 2, 4, 1, 3, 5)
    patches = patches.reshape(B * N, K)

    w_t = weight.astype(compute_dtype).reshape(hidden, K).T   # (K, hidden)
    b2 = bias.astype(jnp.float32).reshape(1, hidden)          # f32 bias add

    # Pad the contraction dim to a lane multiple (192 -> 256 at the real
    # config): unmasked vld and one full 256-deep MXU pass on v6e/v7x.
    if K > 128 and K % 128 != 0:
        Kp = pl.cdiv(K, 128) * 128
        patches = jnp.pad(patches, ((0, 0), (0, Kp - K)))
        w_t = jnp.pad(w_t, ((0, Kp - K), (0, 0)))
    else:
        Kp = K

    # --- row tiling: many patches per grid step, tm | M when possible ------
    M = B * N
    tm, Mp = _choose_row_tile(M, cap=row_tile_cap)
    if Mp != M:
        patches = jnp.pad(patches, ((0, Mp - M), (0, 0)))

    cdt_bytes = jnp.dtype(compute_dtype).itemsize
    odt_bytes = jnp.dtype(out_dtype).itemsize
    cost = pl.CostEstimate(
        flops=2 * Mp * Kp * hidden,
        transcendentals=0,
        bytes_accessed=(Mp * Kp * cdt_bytes + Kp * hidden * cdt_bytes
                        + Mp * hidden * odt_bytes + hidden * 4),
    )

    out = pl.pallas_call(
        _patch_embed_kernel,
        out_shape=jax.ShapeDtypeStruct((Mp, hidden), out_dtype),
        grid_spec=pltpu.PrefetchScalarGridSpec(
            num_scalar_prefetch=0,
            grid=(Mp // tm,),
            in_specs=[
                pl.BlockSpec((tm, Kp), lambda i: (i, 0)),       # patch-row tile
                pl.BlockSpec((Kp, hidden), lambda i: (0, 0)),   # W^T (resident)
                pl.BlockSpec((1, hidden), lambda i: (0, 0)),    # bias (resident)
            ],
            out_specs=pl.BlockSpec((tm, hidden), lambda i: (i, 0)),
        ),
        compiler_params=pltpu.CompilerParams(
            dimension_semantics=("parallel",)),
        cost_estimate=cost,
    )(patches, w_t, b2)

    if Mp != M:
        out = out[:M]
    return out.reshape(B, N, hidden)


def patch_embeddings_reference(x, weight, bias, *, patch_size):
    """Pure-JAX reference matching the PyTorch forward exactly."""
    y = lax.conv_general_dilated(
        x, weight,
        window_strides=(patch_size, patch_size),
        padding="VALID",
        dimension_numbers=("NCHW", "OIHW", "NCHW"),
        precision=lax.Precision.HIGHEST)
    y = y + bias.reshape(1, -1, 1, 1)
    B, D, nh, nw = y.shape
    return y.reshape(B, D, nh * nw).transpose(0, 2, 1)


if __name__ == "__main__":
    # Small shapes consistent with the module: patch_size=8, num_channels=3,
    # scaled-down image (16x16) and hidden size (32), batch=2.
    B, C, IMG, P, HID = 2, 3, 16, 8, 32

    key = jax.random.PRNGKey(0)
    kx, kw, kb = jax.random.split(key, 3)

    x = jax.random.normal(kx, (B, C, IMG, IMG), dtype=jnp.float32)
    # nn.Conv2d default init bounds
    fan_in = C * P * P
    bound = 1.0 / math.sqrt(fan_in)
    weight = jax.random.uniform(kw, (HID, C, P, P), minval=-bound, maxval=bound,
                                dtype=jnp.float32)
    bias = jax.random.uniform(kb, (HID,), minval=-bound, maxval=bound,
                              dtype=jnp.float32)

    ref = patch_embeddings_reference(x, weight, bias, patch_size=P)
    num_patches = (IMG // P) ** 2

    # 1) Exact-path check: f32 operands, tight tolerance vs the conv reference.
    out_f32 = patch_embeddings(x, weight, bias, patch_size=P,
                               compute_dtype=jnp.float32)
    out_f32 = jax.block_until_ready(out_f32)
    assert out_f32.shape == (B, num_patches, HID), out_f32.shape
    assert jnp.allclose(out_f32, ref, atol=1e-4, rtol=1e-4), float(
        jnp.max(jnp.abs(out_f32 - ref)))

    # 2) Default fast path: bf16 operands / f32 accumulate (standard ViT
    #    patch-embed numeric regime) -> looser tolerance vs the f32 reference.
    out_bf16 = patch_embeddings(x, weight, bias, patch_size=P)
    out_bf16 = jax.block_until_ready(out_bf16)
    assert out_bf16.shape == (B, num_patches, HID), out_bf16.shape
    assert jnp.allclose(out_bf16.astype(jnp.float32), ref,
                        atol=5e-2, rtol=5e-2), float(
        jnp.max(jnp.abs(out_bf16.astype(jnp.float32) - ref)))

    print("KERNEL_OK")
</pallas_src>

<mosaic_0001>
module attributes {stable_mosaic.version = 11 : i64} {
  func.func @_patch_embed_kernel(%arg0: i32, %arg1: memref<8x256xf32, #tpu.memory_space<vmem>>, %arg2: memref<256x32xf32, #tpu.memory_space<vmem>>, %arg3: memref<1x32xf32, #tpu.memory_space<vmem>>, %arg4: memref<8x32xf32, #tpu.memory_space<vmem>>) attributes {dimension_semantics = [#tpu.dimension_semantics<parallel>], iteration_bounds = array<i64: 1>, scalar_prefetch = 0 : i64, scratch_operands = 0 : i64, tpu.core_type = #tpu.core_type<tc>, window_params = [{transform_indices = @transform_0, window_bounds = array<i64: 8, 256>}, {pipeline_mode = #tpu.pipeline_mode<synchronous>, transform_indices = @transform_1, window_bounds = array<i64: 256, 32>}, {pipeline_mode = #tpu.pipeline_mode<synchronous>, transform_indices = @transform_2, window_bounds = array<i64: 1, 32>}, {transform_indices = @transform_3, window_bounds = array<i64: 8, 32>}]} {
    %c0 = arith.constant 0 : index
    %c0_0 = arith.constant 0 : index
    %0 = vector.load %arg1[%c0, %c0_0] : memref<8x256xf32, #tpu.memory_space<vmem>>, vector<8x256xf32>
    %c0_1 = arith.constant 0 : index
    %c0_2 = arith.constant 0 : index
    %1 = vector.load %arg2[%c0_1, %c0_2] : memref<256x32xf32, #tpu.memory_space<vmem>>, vector<256x32xf32>
    %cst = arith.constant dense<0.000000e+00> : vector<8x32xf32>
    %2 = tpu.matmul %0, %1, %cst {dimension_numbers = #tpu.dot_dimension_numbers<[1], [0], [0], [1], [0, 0, 1, 1], [], []>} : vector<8x256xf32>, vector<256x32xf32>, vector<8x32xf32> -> vector<8x32xf32>
    %c0_3 = arith.constant 0 : index
    %c0_4 = arith.constant 0 : index
    %3 = vector.load %arg3[%c0_3, %c0_4] : memref<1x32xf32, #tpu.memory_space<vmem>>, vector<1x32xf32>
    %4 = vector.broadcast %3 : vector<1x32xf32> to vector<8x32xf32>
    %5 = arith.addf %2, %4 : vector<8x32xf32>
    %c0_5 = arith.constant 0 : index
    %c0_6 = arith.constant 0 : index
    %6 = vector.load %arg4[%c0_5, %c0_6] : memref<8x32xf32, #tpu.memory_space<vmem>>, vector<8x32xf32>
    tpu.vector_store %arg4[%c0_5, %c0_6], %5 {strides = array<i32>} : memref<8x32xf32, #tpu.memory_space<vmem>>, vector<8x32xf32>,
    return
  }
  func.func @transform_0(%arg0: i32) -> (i32, i32) {
    %c0_i32 = arith.constant 0 : i32
    %c0_i32_0 = arith.constant 0 : i32
    return %arg0, %c0_i32 : i32, i32
  }
  func.func @transform_1(%arg0: i32) -> (i32, i32) {
    %c0_i32 = arith.constant 0 : i32
    %c0_i32_0 = arith.constant 0 : i32
    %c0_i32_1 = arith.constant 0 : i32
    return %c0_i32, %c0_i32_0 : i32, i32
  }
  func.func @transform_2(%arg0: i32) -> (i32, i32) {
    %c0_i32 = arith.constant 0 : i32
    %c0_i32_0 = arith.constant 0 : i32
    %c0_i32_1 = arith.constant 0 : i32
    return %c0_i32, %c0_i32_0 : i32, i32
  }
  func.func @transform_3(%arg0: i32) -> (i32, i32) {
    %c0_i32 = arith.constant 0 : i32
    %c0_i32_0 = arith.constant 0 : i32
    return %arg0, %c0_i32 : i32, i32
  }
}

</mosaic_0001>

<bundles_post_ra>
// kernel: tpu_custom_call.1
= control target key start
LH: loop header
LB: loop body
LE: loop exit
PB: predicated region body
PF: predicated region fallthrough
CT: control target
= control target key end

     0   :  { %s268_s0 = inlined_call_operand.vmem [shape: f32[8,256], index: 0, kind: input, shape index: {}]   ;;  %s269_s1 = inlined_call_operand.vmem [shape: f32[256,32], index: 1, kind: input, shape index: {}]   ;;  %s270_s2 = inlined_call_operand.vmem [shape: f32[1,32], index: 2, kind: input, shape index: {}]   ;;  %s271_s3 = inlined_call_operand.hbm [shape: f32[8,32], index: 3, kind: output, shape index: {}]  }
   0x1   :  { %v32_v0 = vld [vmem:[%s269_s1 + $0x78] sm:$0xff]  ;;  %v31_v1 = vld [vmem:[%s269_s1 + $0x70] sm:$0xff]  ;;  %v30_v4 = vld [vmem:[%s269_s1 + $0x68] sm:$0xff] }
   0x2   :  { %v48_v2 = vld [vmem:[%s269_s1 + $0xf8] sm:$0xff]  ;;  %53 = vmatpush.msra.mxu0 %v32_v0  ;;  %v47_v3 = vld [vmem:[%s269_s1 + $0xf0] sm:$0xff]  ;;  %v46_v5 = vld [vmem:[%s269_s1 + $0xe8] sm:$0xff] }
   0x3   :  { %73 = vmatpush.msra.mxu1 %v48_v2  ;;  %v29_v6 = vld [vmem:[%s269_s1 + $0x60] sm:$0xff]  ;;  %v28_v8 = vld [vmem:[%s269_s1 + $0x58] sm:$0xff]  ;;  %v27_v10 = vld [vmem:[%s269_s1 + $0x50] sm:$0xff] }
   0x4   :  { %54 = vmatpush.msra.mxu0 %v31_v1  ;;  %v45_v7 = vld [vmem:[%s269_s1 + $0xe0] sm:$0xff]  ;;  %v44_v9 = vld [vmem:[%s269_s1 + $0xd8] sm:$0xff]  ;;  %v43_v11 = vld [vmem:[%s269_s1 + $0xd0] sm:$0xff] }
   0x5   :  { %74 = vmatpush.msra.mxu1 %v47_v3  ;;  %v26_v12 = vld [vmem:[%s269_s1 + $0x48] sm:$0xff]  ;;  %v25_v14 = vld [vmem:[%s269_s1 + $0x40] sm:$0xff] }
   0x6   :  { %55 = vmatpush.msra.mxu0 %v30_v4  ;;  %v42_v13 = vld [vmem:[%s269_s1 + $0xc8] sm:$0xff]  ;;  %v41_v15 = vld [vmem:[%s269_s1 + $0xc0] sm:$0xff] }
   0x7   :  { %75 = vmatpush.msra.mxu1 %v46_v5 }
   0x8   :  { %56 = vmatpush.msra.mxu0 %v29_v6 }
   0x9   :  { %76 = vmatpush.msra.mxu1 %v45_v7 }
   0xa   :  { %57 = vmatpush.msra.mxu0 %v28_v8 }
   0xb   :  { %77 = vmatpush.msra.mxu1 %v44_v9 }
   0xc   :  { %58 = vmatpush.msra.mxu0 %v27_v10 }
   0xd   :  { %78 = vmatpush.msra.mxu1 %v43_v11 }
   0xe   :  { %8 = vsyncpa [#allocation3], 0  ;;  %59 = vmatpush.msra.mxu0 %v26_v12  ;;  %v24_v16 = vld [vmem:[%s269_s1 + $0x38] sm:$0xff]  ;;  %v23_v18 = vld [vmem:[%s269_s1 + $0x30] sm:$0xff]  ;;  %s102_s4 = sshll.u32 %s271_s3, 4  ;;  %vm93_vm0 = vcmask 261120   ;;  %s103_s4 = int_to_ptr.hbm [resolvable:$true] %s102_s4 }
   0xf   :  { %79 = vmatpush.msra.mxu1 %v42_v13  ;;  %v40_v17 = vld [vmem:[%s269_s1 + $0xb8] sm:$0xff]  ;;  %v39_v19 = vld [vmem:[%s269_s1 + $0xb0] sm:$0xff]  ;;  %v22_v20 = vld [vmem:[%s269_s1 + $0x28] sm:$0xff] }
  0x10   :  { %60 = vmatpush.msra.mxu0 %v25_v14  ;;  %v38_v21 = vld [vmem:[%s269_s1 + $0xa8] sm:$0xff]  ;;  %v21_v22 = vld [vmem:[%s269_s1 + $0x20] sm:$0xff]  ;;  %v20_v24 = vld [vmem:[%s269_s1 + $0x18] sm:$0xff] }
  0x11   :  { %80 = vmatpush.msra.mxu1 %v41_v15  ;;  %v37_v23 = vld [vmem:[%s269_s1 + $0xa0] sm:$0xff]  ;;  %v36_v25 = vld [vmem:[%s269_s1 + $0x98] sm:$0xff]  ;;  %v19_v26 = vld [vmem:[%s269_s1 + $0x10] sm:$0xff] }
  0x12   :  { %61 = vmatpush.msra.mxu0 %v24_v16  ;;  %v35_v27 = vld [vmem:[%s269_s1 + $0x90] sm:$0xff]  ;;  %v18_v28 = vld [vmem:[%s269_s1 + $0x8] sm:$0xff]  ;;  %v17_v30 = vld [vmem:[%s269_s1] sm:$0xff] }
  0x13   :  { %81 = vmatpush.msra.mxu1 %v40_v17  ;;  %v34_v29 = vld [vmem:[%s269_s1 + $0x88] sm:$0xff]  ;;  %v33_v31 = vld [vmem:[%s269_s1 + $0x80] sm:$0xff]  ;;  %s139_s1 = smov [#allocation2]  }
  0x14   :  { %62 = vmatpush.msra.mxu0 %v23_v18  ;;  %v15_v32 = vld [vmem:[%s268_s0] sm:$0xff]  ;;  %v16_v33 = vld [vmem:[%s268_s0 + $0x8] sm:$0xff]  ;;  %s100_s28 = sshll.u32 %s139_s1, 4  ;;  %s101_s28 = int_to_ptr.vmem [resolvable:$true] %s100_s28 }
  0x15   :  { %82 = vmatpush.msra.mxu1 %v39_v19  ;;  %v112_v34 = vld [vmem:[%s270_s2] ss:$0 sm:$0xff] }
  0x16   :  { %63 = vmatpush.msra.mxu0 %v22_v20 }
  0x17   :  { %83 = vmatpush.msra.mxu1 %v38_v21 }
  0x18   :  { %64 = vmatpush.msra.mxu0 %v21_v22 }
  0x19   :  { %84 = vmatpush.msra.mxu1 %v37_v23 }
  0x1a   :  { %65 = vmatpush.msra.mxu0 %v20_v24 }
  0x1b   :  { %85 = vmatpush.msra.mxu1 %v36_v25 }
  0x1c   :  { %66 = vmatpush.msra.mxu0 %v19_v26 }
  0x1d   :  { %86 = vmatpush.msra.mxu1 %v35_v27 }
  0x1e   :  { %67 = vmatpush.msra.mxu0 %v18_v28 }
  0x1f   :  { %87 = vmatpush.msra.mxu1 %v34_v29 }
  0x20   :  { %68 = vmatpush.msra.mxu0 %v17_v30 }
  0x21   :  { %88 = vmatpush.msra.mxu1 %v33_v31  ;;  %69 = vmatmul.f32.vlgmr.msra.gmra.mxu0 %v15_v32 }
  0x22   :  { %89 = vmatmul.f32.vlgmr.msra.gmra.mxu1 %v16_v33 }
  0x9e   :  { %v70_v35 = vpop.f32.mrf.mxu0 }
  0x9f   :  { %v90_v36 = vpop.f32.mrf.mxu1  ;;  %v71_v37 = vadd.f32 %v112_v34, %v70_v35 }
  0xa1   :  { %v91_v38 = vadd.f32 %v90_v36, %v71_v37 }
  0xa3   :  { %94 = vst.msk [vmem:[#allocation2] sm:$0xff] %vm93_vm0, %v91_v38 }
  0xa4   :  { %105 = dma.vmem_to_hbm [thread:$0]  %s101_s28, 128, %s103_s4, [#allocation3]  }
  0xa5   :  { %137 = dma.done.wait [#allocation3], 128  }
  0xa6   :  { %138 = vsyncadd [#allocation3], 4294967168 }
  0xa7   :  { %110 = vsyncpa [#allocation3], 1 }

</bundles_post_ra>
